<compile_context>
chip_gen: v7x
topology: tpu7x:2x2x1
jax: 0.10.0
libtpu: 0.0.40
codegen_flags: <defaults>
</compile_context>

<pallas_src>
import jax
import jax.numpy as jnp
from jax.experimental import pallas as pl
from jax.experimental.pallas import tpu as pltpu


def ffnn_kernel(x_ref, w1_ref, b1_ref, w2_ref, b2_ref, o_ref):
    # x_ref : (D_in, TB)  activations, batch on lanes
    # w1_ref: (H, D_in)   first-layer weight (resident)
    # b1_ref: (H, 1)      first-layer bias (broadcast over lanes/batch)
    # w2_ref: (H, 1)      second-layer weight as a column (broadcast over lanes/batch)
    # b2_ref: (1, 1)      second-layer bias, SMEM scalar
    # o_ref : (1, TB)     lane-dense output block

    # hidden = relu(W1 @ x^T + b1)  -> (H, TB), f32 accumulation on the MXU
    h = jnp.dot(w1_ref[...], x_ref[...], preferred_element_type=jnp.float32)
    h = jnp.maximum(h + b1_ref[...], 0.0)

    # Dropout: module is evaluated in inference mode -> identity.
    # TODO(synk): train-mode dropout would use pltpu.prng_seed (reseeded per grid step)
    #             + pltpu.stateful_bernoulli mask with a 1/(1-p) rescale.

    # Second layer as a VPU multiply + XLU sublane reduction instead of an N=1 matmul.
    o = jnp.sum(h * w2_ref[...], axis=0, keepdims=True)  # (1, TB)
    o_ref[...] = o + b2_ref[0, 0]


def ffnn_forward(x, w1, b1, w2, b2, *, tile_b=512):
    """FFNN forward (eval mode).

    x : (B, D_in) f32
    w1: (H, D_in), b1: (H,)   -- first Linear (PyTorch layout)
    w2: (1, H),   b2: (1,)    -- second Linear (PyTorch layout)
    returns (B, 1) f32
    """
    B, D_in = x.shape
    H = w1.shape[0]

    # Choose a batch tile: full array when small, lane-aligned tiles when large.
    tb = tile_b if B > tile_b else B
    B_pad = pl.cdiv(B, tb) * tb

    x_t = x.T  # (D_in, B): batch on the lane axis
    if B_pad != B:
        x_t = jnp.pad(x_t, ((0, 0), (0, B_pad - B)))

    b1_col = b1.reshape(H, 1)
    w2_col = w2.reshape(H, 1)
    b2_s = b2.reshape(1, 1)

    out = pl.pallas_call(
        ffnn_kernel,
        out_shape=jax.ShapeDtypeStruct((1, B_pad), jnp.float32),
        grid_spec=pltpu.PrefetchScalarGridSpec(
            num_scalar_prefetch=0,
            grid=(B_pad // tb,),
            in_specs=[
                pl.BlockSpec((D_in, tb), lambda i: (0, i)),        # x^T tiles stream
                pl.BlockSpec((H, D_in), lambda i: (0, 0)),         # W1 resident
                pl.BlockSpec((H, 1), lambda i: (0, 0)),            # b1 resident
                pl.BlockSpec((H, 1), lambda i: (0, 0)),            # w2 resident
                pl.BlockSpec(memory_space=pltpu.MemorySpace.SMEM), # b2 scalar in SMEM
            ],
            out_specs=pl.BlockSpec((1, tb), lambda i: (0, i)),     # lane-dense output
        ),
        compiler_params=pltpu.CompilerParams(
            dimension_semantics=("parallel",)),                    # batch tiles independent
    )(x_t, w1, b1_col, w2_col, b2_s)

    return out[:, :B].T  # (B, 1)


def ffnn_reference(x, w1, b1, w2, b2):
    h = jnp.maximum(x @ w1.T + b1, 0.0)
    return h @ w2.T + b2


if __name__ == "__main__":
    # Small shapes consistent with FFNN(input_dim=32, hidden_dim=32, p_dropout=0.1)
    batch, input_dim, hidden_dim = 8, 32, 32

    key = jax.random.PRNGKey(0)
    k_x, k_w1, k_b1, k_w2, k_b2 = jax.random.split(key, 5)

    x = jax.random.normal(k_x, (batch, input_dim), dtype=jnp.float32)

    # Deterministic parameter init (PyTorch-Linear-style uniform bounds), natural layout.
    bound1 = 1.0 / jnp.sqrt(input_dim)
    w1 = jax.random.uniform(k_w1, (hidden_dim, input_dim),
                            minval=-bound1, maxval=bound1, dtype=jnp.float32)
    b1 = jax.random.uniform(k_b1, (hidden_dim,),
                            minval=-bound1, maxval=bound1, dtype=jnp.float32)
    bound2 = 1.0 / jnp.sqrt(hidden_dim)
    w2 = jax.random.uniform(k_w2, (1, hidden_dim),
                            minval=-bound2, maxval=bound2, dtype=jnp.float32)
    b2 = jax.random.uniform(k_b2, (1,),
                            minval=-bound2, maxval=bound2, dtype=jnp.float32)

    out = ffnn_forward(x, w1, b1, w2, b2)
    out = jax.block_until_ready(out)

    ref = ffnn_reference(x, w1, b1, w2, b2)
    assert out.shape == (batch, 1), out.shape
    assert jnp.allclose(out, ref, atol=1e-5, rtol=1e-5), "mismatch vs reference"

    print("KERNEL_OK")
</pallas_src>

<mosaic_0001>
module attributes {stable_mosaic.version = 11 : i64} {
  func.func @ffnn_kernel(%arg0: i32, %arg1: memref<32x8xf32, #tpu.memory_space<vmem>>, %arg2: memref<32x32xf32, #tpu.memory_space<vmem>>, %arg3: memref<32x1xf32, #tpu.memory_space<vmem>>, %arg4: memref<32x1xf32, #tpu.memory_space<vmem>>, %arg5: memref<1x1xf32, #tpu.memory_space<smem>>, %arg6: memref<1x8xf32, #tpu.memory_space<vmem>>) attributes {dimension_semantics = [#tpu.dimension_semantics<parallel>], iteration_bounds = array<i64: 1>, scalar_prefetch = 0 : i64, scratch_operands = 0 : i64, tpu.core_type = #tpu.core_type<tc>, window_params = [{transform_indices = @transform_0, window_bounds = array<i64: 32, 8>}, {pipeline_mode = #tpu.pipeline_mode<synchronous>, transform_indices = @transform_1, window_bounds = array<i64: 32, 32>}, {pipeline_mode = #tpu.pipeline_mode<synchronous>, transform_indices = @transform_2, window_bounds = array<i64: 32, 1>}, {pipeline_mode = #tpu.pipeline_mode<synchronous>, transform_indices = @transform_3, window_bounds = array<i64: 32, 1>}, {transform_indices = @transform_4, window_bounds = array<i64: 1, 1>}, {transform_indices = @transform_5, window_bounds = array<i64: 1, 8>}]} {
    %c0 = arith.constant 0 : index
    %c0_0 = arith.constant 0 : index
    %0 = vector.load %arg2[%c0, %c0_0] : memref<32x32xf32, #tpu.memory_space<vmem>>, vector<32x32xf32>
    %c0_1 = arith.constant 0 : index
    %c0_2 = arith.constant 0 : index
    %1 = vector.load %arg1[%c0_1, %c0_2] : memref<32x8xf32, #tpu.memory_space<vmem>>, vector<32x8xf32>
    %cst = arith.constant dense<0.000000e+00> : vector<32x8xf32>
    %2 = tpu.matmul %0, %1, %cst {dimension_numbers = #tpu.dot_dimension_numbers<[1], [0], [0], [1], [0, 0, 1, 1], [], []>} : vector<32x32xf32>, vector<32x8xf32>, vector<32x8xf32> -> vector<32x8xf32>
    %c0_3 = arith.constant 0 : index
    %c0_4 = arith.constant 0 : index
    %3 = vector.load %arg3[%c0_3, %c0_4] : memref<32x1xf32, #tpu.memory_space<vmem>>, vector<32x1xf32>
    %4 = vector.broadcast %3 : vector<32x1xf32> to vector<32x8xf32>
    %5 = arith.addf %2, %4 : vector<32x8xf32>
    %cst_5 = arith.constant 0.000000e+00 : f32
    %6 = vector.broadcast %cst_5 : f32 to vector<32x8xf32>
    %7 = arith.maximumf %5, %6 : vector<32x8xf32>
    %c0_6 = arith.constant 0 : index
    %c0_7 = arith.constant 0 : index
    %8 = vector.load %arg4[%c0_6, %c0_7] : memref<32x1xf32, #tpu.memory_space<vmem>>, vector<32x1xf32>
    %9 = vector.broadcast %8 : vector<32x1xf32> to vector<32x8xf32>
    %10 = arith.mulf %7, %9 : vector<32x8xf32>
    %cst_8 = arith.constant dense<0.000000e+00> : vector<8xf32>
    %11 = vector.multi_reduction <add>, %10, %cst_8 [0] : vector<32x8xf32> to vector<8xf32>
    %12 = vector.shape_cast %11 : vector<8xf32> to vector<1x8xf32>
    %c0_9 = arith.constant 0 : index
    %c0_10 = arith.constant 0 : index
    %13 = memref.load %arg5[%c0_9, %c0_10] : memref<1x1xf32, #tpu.memory_space<smem>>
    %14 = vector.broadcast %13 : f32 to vector<1x8xf32>
    %15 = arith.addf %12, %14 : vector<1x8xf32>
    %c0_11 = arith.constant 0 : index
    %c0_12 = arith.constant 0 : index
    %16 = vector.load %arg6[%c0_11, %c0_12] : memref<1x8xf32, #tpu.memory_space<vmem>>, vector<1x8xf32>
    tpu.vector_store %arg6[%c0_11, %c0_12], %15 {strides = array<i32>} : memref<1x8xf32, #tpu.memory_space<vmem>>, vector<1x8xf32>,
    return
  }
  func.func @transform_0(%arg0: i32) -> (i32, i32) {
    %c0_i32 = arith.constant 0 : i32
    %c0_i32_0 = arith.constant 0 : i32
    return %c0_i32, %arg0 : i32, i32
  }
  func.func @transform_1(%arg0: i32) -> (i32, i32) {
    %c0_i32 = arith.constant 0 : i32
    %c0_i32_0 = arith.constant 0 : i32
    %c0_i32_1 = arith.constant 0 : i32
    return %c0_i32, %c0_i32_0 : i32, i32
  }
  func.func @transform_2(%arg0: i32) -> (i32, i32) {
    %c0_i32 = arith.constant 0 : i32
    %c0_i32_0 = arith.constant 0 : i32
    %c0_i32_1 = arith.constant 0 : i32
    return %c0_i32, %c0_i32_0 : i32, i32
  }
  func.func @transform_3(%arg0: i32) -> (i32, i32) {
    %c0_i32 = arith.constant 0 : i32
    %c0_i32_0 = arith.constant 0 : i32
    %c0_i32_1 = arith.constant 0 : i32
    return %c0_i32, %c0_i32_0 : i32, i32
  }
  func.func @transform_4(%arg0: i32) -> (i32, i32) {
    %c0_i32 = arith.constant 0 : i32
    %c0_i32_0 = arith.constant 0 : i32
    %c0_i32_1 = arith.constant 0 : i32
    return %c0_i32, %c0_i32_0 : i32, i32
  }
  func.func @transform_5(%arg0: i32) -> (i32, i32) {
    %c0_i32 = arith.constant 0 : i32
    %c0_i32_0 = arith.constant 0 : i32
    return %c0_i32, %arg0 : i32, i32
  }
}

</mosaic_0001>

<bundles_post_ra>
// kernel: tpu_custom_call.1
= control target key start
LH: loop header
LB: loop body
LE: loop exit
PB: predicated region body
PF: predicated region fallthrough
CT: control target
= control target key end

     0   :  { %vm54_vm0 = vcmask 261120   ;;  %v283_v7 = vmov 0   ;;  %s382_s0 = inlined_call_operand.vmem [shape: f32[32,8], index: 0, kind: input, shape index: {}]   ;;  %s383_s1 = inlined_call_operand.vmem [shape: f32[32,32], index: 1, kind: input, shape index: {}]   ;;  %s384_s2 = inlined_call_operand.vmem [shape: f32[32,1], index: 2, kind: input, shape index: {}]   ;;  %s385_s3 = inlined_call_operand.vmem [shape: f32[32,1], index: 3, kind: input, shape index: {}]   ;;  %s386_s4 = inlined_call_operand.<no memory space> [shape: f32[1,1], index: 4, kind: input, shape index: {}]   ;;  %s387_s5 = inlined_call_operand.hbm [shape: f32[1,8], index: 5, kind: output, shape index: {}]  }
   0x1   :  { %v26_v0 = vld [vmem:[%s382_s0] sm:$0xff]  ;;  %v27_v1 = vld [vmem:[%s382_s0 + $0x8] sm:$0xff]  ;;  %v28_v2 = vld [vmem:[%s382_s0 + $0x10] sm:$0xff]  ;;  %257 = vset.pattern.permute.xlu0 %v283_v7  ;;  %258 = vset.pattern.permute.xlu1 %v283_v7 }
   0x2   :  { %v243_v3 = vpack.c.bf16 %v27_v1, %v26_v0  ;;  %v29_v4 = vld [vmem:[%s382_s0 + $0x18] sm:$0xff]  ;;  %v22_v5 = vld [vmem:[%s383_s1] sm:$0xff]  ;;  %v24_v6 = vld [vmem:[%s383_s1 + $0x10] sm:$0xff] }
   0x3   :  { %v247_v8 = vpack.c.bf16 %v29_v4, %v28_v2  ;;  %237 = vmatprep.mubr.msk.f32.mxu0 %vm54_vm0, %v22_v5  ;;  %240 = vmatprep.mubr.msk.f32.mxu1 %vm54_vm0, %v24_v6  ;;  %v30_v9 = vld [vmem:[%s384_s2] sm:$0xff]  ;;  %v32_v10 = vld [vmem:[%s384_s2 + $0x10] sm:$0xff] }
   0x4   :  { %244 = vmatprep.subr.bf16.mxu0 %v243_v3  ;;  %251 = vmatprep.subr.bf16.mxu1 %v243_v3 }
   0x5   :  { %246 = vmatpush3.bf16.msra.mxu0 %v243_v3  ;;  %253 = vmatpush3.bf16.msra.mxu1 %v243_v3 }
   0x6   :  { %248 = vmatprep.subr.bf16.mxu0 %v247_v8  ;;  %252 = vmatprep.subr.bf16.mxu1 %v247_v8 }
   0x7   :  { %11 = vsyncpa [#allocation4], 0  ;;  %36 = vperm.xlu0 %257, %v30_v9   ;;  %46 = vperm.xlu1 %258, %v32_v10   ;;  %v31_v11 = vld [vmem:[%s384_s2 + $0x8] sm:$0xff]  ;;  %v33_v12 = vld [vmem:[%s384_s2 + $0x18] sm:$0xff]  ;;  %vm184_vm1 = vcmask 64512   ;;  %v199_v55 = vstv %s386_s4  ;;  %s284_s23 = smov [#allocation3]  }
   0x8   :  { %v23_v13 = vld [vmem:[%s383_s1 + $0x8] sm:$0xff]  ;;  %v25_v14 = vld [vmem:[%s383_s1 + $0x18] sm:$0xff]  ;;  %v156_v15 = vld [vmem:[%s385_s3] sm:$0xff]  ;;  %s209_s24 = sshll.u32 %s284_s23, 4  ;;  %vm201_vm2 = vcmask 57344   ;;  %s210_s24 = int_to_ptr.vmem [resolvable:$true] %s209_s24 }
   0x9   :  { %250 = vmatpush3.bf16.msra.mxu0 %v247_v8  ;;  %254 = vmatpush3.bf16.msra.mxu1 %v247_v8  ;;  %v157_v16 = vld [vmem:[%s385_s3 + $0x8] sm:$0xff]  ;;  %v158_v17 = vld [vmem:[%s385_s3 + $0x10] sm:$0xff]  ;;  %v159_v18 = vld [vmem:[%s385_s3 + $0x18] sm:$0xff]  ;;  %s259_s25 = scalar_lea.vmem %s210_s24, 16  ;;  %s263_s26 = scalar_lea.vmem %s210_s24, 32 }
   0xa   :  { %p260_p0 = scmp.ne.s32.totalorder %s210_s24, %s259_s25  ;;  %p264_p1 = scmp.lt.s32.totalorder %s210_s24, %s210_s24 }
   0xb   :  { %41 = vperm.xlu0 %257, %v31_v11   ;;  %51 = vperm.xlu1 %258, %v33_v12   ;;  %p265_p2 = scmp.lt.s32.totalorder %s263_s26, %s259_s25 }
   0xc   :  { %238 = vmatmul.mubr.msk.f32.vlgmr.msra.gmra.mrb[0].mxu0 %vm54_vm0, %v23_v13  ;;  %241 = vmatmul.mubr.msk.f32.vlgmr.msra.gmra.mrb[0].mxu1 %vm54_vm0, %v25_v14 }
   0xd   :  { %p266_p3 = por %p265_p2, %p264_p1 }
   0xf   :  { %162 = vperm.xlu0 %257, %v156_v15   ;;  %167 = vperm.xlu1 %258, %v157_v16   ;;  %p267_p4 = pnand %p266_p3, %p260_p0 }
  0x13   :  { %172 = vperm.xlu0 %257, %v158_v17   ;;  %177 = vperm.xlu1 %258, %v159_v18  }
  0x86   :  { %v37_v19 = vpop.permute.xlu0 %36  ;;  %v47_v20 = vpop.permute.xlu1 %46 }
  0x8a   :  { %v42_v21 = vpop.permute.xlu0 %41  ;;  %v52_v22 = vpop.permute.xlu1 %51 }
  0x8e   :  { %v163_v23 = vpop.permute.xlu0 %162  ;;  %v168_v24 = vpop.permute.xlu1 %167 }
  0x92   :  { %v173_v37 = vpop.permute.xlu0 %172  ;;  %v178_v41 = vpop.permute.xlu1 %177 }
  0xdf   :  { %v239_v25 = vpop.f32.mrb[0].mxu0  ;;  %v242_v26 = vpop.f32.mrb[0].mxu1 }
  0xe0   :  { %v139_v27 = vadd.f32 %v239_v25, %v42_v21  ;;  %v149_v28 = vadd.f32 %v242_v26, %v52_v22  ;;  %v133_v29 = vpop.f32.mrb[1].mxu0  ;;  %v143_v30 = vpop.f32.mrb[1].mxu1 }
  0xe1   :  { %v134_v31 = vadd.f32 %v133_v29, %v37_v19  ;;  %v144_v32 = vadd.f32 %v143_v30, %v47_v20 }
  0xe2   :  { %v153_v33 = vmax.f32 %v139_v27, 0.0  ;;  %v155_v34 = vmax.f32 %v149_v28, 0.0 }
  0xe3   :  { %v152_v35 = vmax.f32 %v134_v31, 0.0  ;;  %v154_v36 = vmax.f32 %v144_v32, 0.0 }
  0xe4   :  { %v181_v38 = vmul.f32 %v168_v24, %v153_v33  ;;  %v183_v43 = vmul.f32 %v178_v41, %v155_v34 }
  0xe5   :  { %v180_v39 = vmul.f32 %v163_v23, %v152_v35  ;;  %v182_v40 = vmul.f32 %v173_v37, %v154_v36 }
  0xe6   :  { %v186_v42 = vsel %vm184_vm1, %v181_v38, 0.0  ;;  %v190_v48 = vsel %vm184_vm1, %v183_v43, 0.0 }
  0xe7   :  { %v185_v44 = vsel %vm184_vm1, %v180_v39, 0.0  ;;  %v188_v46 = vsel %vm184_vm1, %v182_v40, 0.0 }
  0xe8   :  { %v187_v45 = vadd.f32 %v186_v42, %v185_v44 }
  0xea   :  { %v189_v47 = vadd.f32 %v188_v46, %v187_v45 }
  0xec   :  { %v191_v49 = vadd.f32 %v190_v48, %v189_v47 }
  0xee   :  { %v192_v50 = vrot.slane %v191_v49, 4 }
  0xf0   :  { %v193_v51 = vadd.f32 %v192_v50, %v191_v49 }
  0xf2   :  { %v194_v52 = vrot.slane %v193_v51, 2 }
  0xf4   :  { %v195_v53 = vadd.f32 %v194_v52, %v193_v51 }
  0xf6   :  { %v196_v54 = vrot.slane %v195_v53, 1 }
  0xf8   :  { %v197_v56 = vadd.f32 %v196_v54, %v195_v53 }
  0xfa   :  { %v200_v57 = vadd.f32 %v199_v55, %v197_v56 }
  0xfc   :  { %202 = vst.msk [vmem:[#allocation3] sm:$0x1] %vm201_vm2, %v200_v57 }
  0xfd   :  { %270 = shalt.err (!%p267_p4)
}
  0xfe   :  { %s271_s29 = scalar_lea.hbm %s387_s5, 16 }
  0xff   :  { %p272_p5 = scmp.ne.s32.totalorder %s387_s5, %s271_s29  ;;  %p275_p6 = scmp.lt.u32.totalorder %s271_s29, %s387_s5 }
 0x101   :  { %p277_p7 = pnand %p275_p6, %p272_p5 }
 0x103   :  { %280 = shalt.err (!%p277_p7)
}
 0x104   :  { %212 = dma.vmem_to_hbm [thread:$0]  %s210_s24, 16, %s387_s5, [#allocation4]  }
 0x105   :  { %281 = dma.done.wait [#allocation4], 16  }
 0x106   :  { %282 = vsyncadd [#allocation4], 4294967280 }
 0x107   :  { %216 = vsyncpa [#allocation4], 1 }

</bundles_post_ra>
